<compile_context>
chip_gen: v6e
topology: v6e:2x2x1
jax: 0.10.0
libtpu: 0.0.40
codegen_flags: <defaults>
</compile_context>

<pallas_src>
import functools

import jax
import jax.numpy as jnp
from jax.experimental import pallas as pl
from jax.experimental.pallas import tpu as pltpu


def _round_up(x: int, m: int) -> int:
    return ((x + m - 1) // m) * m


def _linear_kernel(x_ref, w_ref, b_ref, o_ref):
    # x: (TM, K)  w: (K, Np)  b: (1, Np)  o: (TM, Np)
    acc = jnp.dot(x_ref[...], w_ref[...], preferred_element_type=jnp.float32)
    o_ref[...] = (acc + b_ref[...].astype(jnp.float32)).astype(o_ref.dtype)


def _choose_tm(M: int, K: int, Np: int, itemsize: int = 4,
               vmem_budget: int = 40 << 20) -> int:
    """Row-tile size: large enough to amortize ~600-cycle/step overhead, small
    enough that 2x double-buffered x/out tiles + resident W/bias fit VMEM on
    every generation (v7x has only 64 MiB physical)."""
    tm = min(512, _round_up(M, 8))

    def vmem_bytes(t):
        return (2 * t * (K + Np) + 2 * (K * Np + Np)) * itemsize

    while tm > 16 and tm % 16 == 0 and vmem_bytes(tm) > vmem_budget:
        tm //= 2
    return tm


def _pallas_linear(x2d, w_pad, b_pad, tm):
    """y = x2d @ w_pad + b_pad, tiled over rows.

    x2d:   (Mp, K)  with Mp a multiple of tm
    w_pad: (K, Np)  with Np a multiple of 128 (lane-dense stores)
    b_pad: (1, Np)
    """
    Mp, K = x2d.shape
    Np = w_pad.shape[1]
    itemsize = jnp.dtype(x2d.dtype).itemsize

    cost = pl.CostEstimate(
        flops=2 * Mp * K * Np,
        bytes_accessed=itemsize * (Mp * K + K * Np + Np + Mp * Np),
        transcendentals=0,
    )
    vmem_need = (2 * tm * (K + Np) + 2 * (K * Np + Np)) * itemsize
    vmem_limit = int(min(max(vmem_need + (4 << 20), 32 << 20), 56 << 20))

    return pl.pallas_call(
        _linear_kernel,
        out_shape=jax.ShapeDtypeStruct((Mp, Np), x2d.dtype),
        grid=(Mp // tm,),
        in_specs=[
            pl.BlockSpec((tm, K), lambda i: (i, 0)),   # streamed, double-buffered
            pl.BlockSpec((K, Np), lambda i: (0, 0)),   # resident weight
            pl.BlockSpec((1, Np), lambda i: (0, 0)),   # resident bias
        ],
        out_specs=pl.BlockSpec((tm, Np), lambda i: (i, 0)),
        compiler_params=pltpu.CompilerParams(
            dimension_semantics=("parallel",),          # megacore sharding (v7x)
            vmem_limit_bytes=vmem_limit,
        ),
        cost_estimate=cost,
    )(x2d, w_pad, b_pad)


@functools.partial(
    jax.jit,
    static_argnames=("patch_size", "channels", "spatial", "patch_dim", "tm"))
def _forward(x, w_pad, b_pad, *, patch_size, channels, spatial, patch_dim, tm):
    B, L, D = x.shape
    M = B * L
    Mp = _round_up(M, tm)

    x2 = x.reshape(M, D)
    if Mp != M:                      # pad rows so the grid has no ragged tail
        x2 = jnp.pad(x2, ((0, Mp - M), (0, 0)))

    y = _pallas_linear(x2, w_pad, b_pad, tm)
    y = y[:M, :patch_dim]            # drop row padding + lane padding

    # Rearrange 'b (h w) (p1 p2 c) -> b c (h p1) (w p2)'  (layout glue, NCHW)
    p, c, h = patch_size, channels, spatial
    y = y.reshape(B, h, h, p, p, c)            # b, h, w, p1, p2, c
    y = jnp.transpose(y, (0, 5, 1, 3, 2, 4))   # b, c, h, p1, w, p2
    return y.reshape(B, c, h * p, h * p)       # b, c, H, W


class InversePatchEmbeddingPallas:
    def __init__(self, image_size: int, patch_size: int, channels: int, dim: int,
                 key=jax.random.PRNGKey(0), dtype=jnp.float32):
        self.image_size = image_size
        self.patch_size = patch_size
        self.channels = channels
        self.dim = dim
        self.patch_dim = patch_size ** 2 * channels
        self.spatial_dim = image_size // patch_size
        self.n_pad = _round_up(self.patch_dim, 128)   # lane-dense output width

        # Deterministic init matching nn.Linear's uniform(-1/sqrt(dim), 1/sqrt(dim)).
        kw, kb = jax.random.split(key)
        bound = 1.0 / (dim ** 0.5)
        # Stored transposed: (dim, patch_dim) so the kernel computes x @ W.
        self.weight = jax.random.uniform(
            kw, (dim, self.patch_dim), dtype=dtype, minval=-bound, maxval=bound)
        self.bias = jax.random.uniform(
            kb, (self.patch_dim,), dtype=dtype, minval=-bound, maxval=bound)

        # Zero-padded copies so kernel stores are full 128-lane lines.
        pad = self.n_pad - self.patch_dim
        self.weight_pad = jnp.pad(self.weight, ((0, 0), (0, pad)))
        self.bias_pad = jnp.pad(self.bias, ((0, pad),)).reshape(1, self.n_pad)

    def __call__(self, x):
        B, L, D = x.shape
        assert D == self.dim and L == self.spatial_dim ** 2
        tm = _choose_tm(B * L, D, self.n_pad,
                        itemsize=jnp.dtype(x.dtype).itemsize)
        return _forward(
            x, self.weight_pad, self.bias_pad,
            patch_size=self.patch_size, channels=self.channels,
            spatial=self.spatial_dim, patch_dim=self.patch_dim, tm=tm)


if __name__ == "__main__":
    # Small shapes consistent with the module: image_size=16, patch_size=4,
    # channels=4, dim=32 -> L = (16/4)^2 = 16 patches, patch_dim = 64.
    image_size, patch_size, channels, dim = 16, 4, 4, 32
    B = 2
    spatial = image_size // patch_size
    L = spatial ** 2

    key = jax.random.PRNGKey(0)
    k_x, k_p = jax.random.split(key)
    x = jax.random.normal(k_x, (B, L, dim), dtype=jnp.float32)

    module = InversePatchEmbeddingPallas(image_size, patch_size, channels, dim,
                                         key=k_p)
    out = jax.block_until_ready(module(x))
    assert out.shape == (B, channels, image_size, image_size), out.shape

    # Pure-JAX reference of the same math (unpadded weights).
    y_ref = x.reshape(B * L, dim) @ module.weight + module.bias
    y_ref = y_ref.reshape(B, spatial, spatial, patch_size, patch_size, channels)
    y_ref = jnp.transpose(y_ref, (0, 5, 1, 3, 2, 4)).reshape(
        B, channels, image_size, image_size)
    assert jnp.allclose(out, y_ref, atol=1e-5, rtol=1e-5)

    print("KERNEL_OK")
</pallas_src>

<mosaic_0001>
module attributes {stable_mosaic.version = 11 : i64} {
  func.func @_linear_kernel(%arg0: i32, %arg1: memref<32x32xf32, #tpu.memory_space<vmem>>, %arg2: memref<32x128xf32, #tpu.memory_space<vmem>>, %arg3: memref<1x128xf32, #tpu.memory_space<vmem>>, %arg4: memref<32x128xf32, #tpu.memory_space<vmem>>) attributes {dimension_semantics = [#tpu.dimension_semantics<parallel>], iteration_bounds = array<i64: 1>, scalar_prefetch = 0 : i64, scratch_operands = 0 : i64, tpu.core_type = #tpu.core_type<tc>, window_params = [{transform_indices = @transform_0, window_bounds = array<i64: 32, 32>}, {pipeline_mode = #tpu.pipeline_mode<synchronous>, transform_indices = @transform_1, window_bounds = array<i64: 32, 128>}, {pipeline_mode = #tpu.pipeline_mode<synchronous>, transform_indices = @transform_2, window_bounds = array<i64: 1, 128>}, {transform_indices = @transform_3, window_bounds = array<i64: 32, 128>}]} {
    %c0 = arith.constant 0 : index
    %c0_0 = arith.constant 0 : index
    %0 = vector.load %arg1[%c0, %c0_0] : memref<32x32xf32, #tpu.memory_space<vmem>>, vector<32x32xf32>
    %c0_1 = arith.constant 0 : index
    %c0_2 = arith.constant 0 : index
    %1 = vector.load %arg2[%c0_1, %c0_2] : memref<32x128xf32, #tpu.memory_space<vmem>>, vector<32x128xf32>
    %cst = arith.constant dense<0.000000e+00> : vector<32x128xf32>
    %2 = tpu.matmul %0, %1, %cst {dimension_numbers = #tpu.dot_dimension_numbers<[1], [0], [0], [1], [0, 0, 1, 1], [], []>} : vector<32x32xf32>, vector<32x128xf32>, vector<32x128xf32> -> vector<32x128xf32>
    %c0_3 = arith.constant 0 : index
    %c0_4 = arith.constant 0 : index
    %3 = vector.load %arg3[%c0_3, %c0_4] : memref<1x128xf32, #tpu.memory_space<vmem>>, vector<1x128xf32>
    %4 = vector.broadcast %3 : vector<1x128xf32> to vector<32x128xf32>
    %5 = arith.addf %2, %4 : vector<32x128xf32>
    %c0_5 = arith.constant 0 : index
    %c0_6 = arith.constant 0 : index
    %6 = vector.load %arg4[%c0_5, %c0_6] : memref<32x128xf32, #tpu.memory_space<vmem>>, vector<32x128xf32>
    tpu.vector_store %arg4[%c0_5, %c0_6], %5 {strides = array<i32>} : memref<32x128xf32, #tpu.memory_space<vmem>>, vector<32x128xf32>,
    return
  }
  func.func @transform_0(%arg0: i32) -> (i32, i32) {
    %c0_i32 = arith.constant 0 : i32
    %c0_i32_0 = arith.constant 0 : i32
    return %arg0, %c0_i32 : i32, i32
  }
  func.func @transform_1(%arg0: i32) -> (i32, i32) {
    %c0_i32 = arith.constant 0 : i32
    %c0_i32_0 = arith.constant 0 : i32
    %c0_i32_1 = arith.constant 0 : i32
    return %c0_i32, %c0_i32_0 : i32, i32
  }
  func.func @transform_2(%arg0: i32) -> (i32, i32) {
    %c0_i32 = arith.constant 0 : i32
    %c0_i32_0 = arith.constant 0 : i32
    %c0_i32_1 = arith.constant 0 : i32
    return %c0_i32, %c0_i32_0 : i32, i32
  }
  func.func @transform_3(%arg0: i32) -> (i32, i32) {
    %c0_i32 = arith.constant 0 : i32
    %c0_i32_0 = arith.constant 0 : i32
    return %arg0, %c0_i32 : i32, i32
  }
}

</mosaic_0001>

<bundles_post_ra>
// kernel: _forward.1
= control target key start
LH: loop header
LB: loop body
LE: loop exit
PB: predicated region body
PF: predicated region fallthrough
CT: control target
= control target key end

     0   :  { %8 = vsyncpa [#allocation3], 0  ;;  %s293_s0 = inlined_call_operand.hbm [shape: f32[32,32], index: 0, kind: input, shape index: {}]   ;;  %s294_s1 = inlined_call_operand.hbm [shape: f32[32,128], index: 1, kind: input, shape index: {}]   ;;  %s295_s2 = inlined_call_operand.vmem [shape: f32[1,128], index: 2, kind: input, shape index: {}]   ;;  %s296_s3 = inlined_call_operand.vmem [shape: f32[32,128], index: 3, kind: output, shape index: {}]  }
   0x1   :  { %9 = vsyncpa [#allocation5], 0  ;;  %s248_s12 = smov [#allocation2]  }
   0x2   :  { %s15_s13 = sshll.u32 %s248_s12, 4  ;;  %s16_s13 = int_to_ptr.vmem [resolvable:$true] %s15_s13 }
   0x3   :  { %s212_s14 = scalar_lea.vmem %s16_s13, 512  ;;  %p217_p1 = scmp.lt.s32.totalorder %s16_s13, %s16_s13 }
   0x4   :  { %p213_p0 = scmp.ne.s32.totalorder %s16_s13, %s212_s14  ;;  %p218_p2 = scmp.lt.s32.totalorder %s212_s14, %s212_s14 }
   0x6   :  { %p219_p3 = por %p218_p2, %p217_p1 }
   0x8   :  { %p220_p4 = pnand %p219_p3, %p213_p0 }
   0xa   :  { %223 = shalt.err (!%p220_p4)
}
   0xb   :  { %s249_s15 = smov 128   ;;  %s250_s16 = smov 8  }
   0xc   :  { %21 = dma.hbm_to_vmem [thread:$0]  %s293_s0, 512, %s16_s13, [#allocation3], %s249_s15, %s249_s15, %s250_s16  }
   0xd   :  { %s251_s19 = smov [#allocation4]  }
   0xe   :  { %s27_s20 = sshll.u32 %s251_s19, 4  ;;  %s28_s20 = int_to_ptr.vmem [resolvable:$true] %s27_s20 }
   0xf   :  { %s232_s21 = scalar_lea.vmem %s28_s20, 512  ;;  %p237_p6 = scmp.lt.s32.totalorder %s28_s20, %s28_s20 }
  0x10   :  { %p233_p5 = scmp.ne.s32.totalorder %s28_s20, %s232_s21  ;;  %p238_p7 = scmp.lt.s32.totalorder %s232_s21, %s232_s21 }
  0x12   :  { %p239_p8 = por %p238_p7, %p237_p6 }
  0x14   :  { %p240_p9 = pnand %p239_p8, %p233_p5 }
  0x16   :  { %243 = shalt.err (!%p240_p9)
}
  0x17   :  { %33 = dma.hbm_to_vmem [thread:$0]  %s294_s1, 512, %s28_s20, [#allocation5], %s249_s15, %s249_s15, %s250_s16  }
  0x18   :  { %244 = dma.done.wait [#allocation3], 512  }
  0x19   :  { %245 = vsyncadd [#allocation3], 4294966784 }
  0x1a   :  { %246 = dma.done.wait [#allocation5], 512  }
  0x1b   :  { %247 = vsyncadd [#allocation5], 4294966784  ;;  %v49_v0 = vld [vmem:[#allocation4 + $0x18] sm:$0xff]  ;;  %v48_v1 = vld [vmem:[#allocation4 + $0x10] sm:$0xff]  ;;  %vm57_vm0 = vcmask 261120  }
  0x1c   :  { %178 = vmatprep.subr.mxu0 %v49_v0  ;;  %192 = vmatprep.subr.mxu1 %v49_v0  ;;  %v47_v2 = vld [vmem:[#allocation4 + $0x8] sm:$0xff]  ;;  %v46_v3 = vld [vmem:[#allocation4] sm:$0xff]  ;;  %v44_v5 = vld [vmem:[#allocation2 + $0x10] sm:$0xff] }
  0x1d   :  { %179 = vmatpush3.msra.mxu0 %v49_v0  ;;  %196 = vmatpush3.msra.mxu1 %v49_v0  ;;  %v42_v4 = vld [vmem:[#allocation2] sm:$0xff]  ;;  %v43_v6 = vld [vmem:[#allocation2 + $0x8] sm:$0xff]  ;;  %v45_v7 = vld [vmem:[#allocation2 + $0x18] sm:$0xff] }
  0x1e   :  { %180 = vmatprep.subr.mxu0 %v48_v1  ;;  %193 = vmatprep.subr.mxu1 %v48_v1  ;;  %v165_v8 = vld [vmem:[%s295_s2] ss:$0 sm:$0xff] }
  0x1f   :  { %181 = vmatpush3.msra.mxu0 %v48_v1  ;;  %197 = vmatpush3.msra.mxu1 %v48_v1 }
  0x20   :  { %182 = vmatprep.subr.mxu0 %v47_v2  ;;  %194 = vmatprep.subr.mxu1 %v47_v2 }
  0x21   :  { %183 = vmatpush3.msra.mxu0 %v47_v2  ;;  %198 = vmatpush3.msra.mxu1 %v47_v2 }
  0x22   :  { %184 = vmatprep.subr.mxu0 %v46_v3  ;;  %195 = vmatprep.subr.mxu1 %v46_v3 }
  0x23   :  { %185 = vmatpush3.msra.mxu0 %v46_v3  ;;  %199 = vmatpush3.msra.mxu1 %v46_v3 }
  0x24   :  { %186 = vmatprep.mubr.msk.f32.mxu0 %vm57_vm0, %v42_v4  ;;  %189 = vmatprep.mubr.msk.f32.mxu1 %vm57_vm0, %v44_v5 }
  0x25   :  { %187 = vmatmul.mubr.msk.f32.vlgmr.msra.gmra.mxu0 %vm57_vm0, %v43_v6  ;;  %190 = vmatmul.mubr.msk.f32.vlgmr.msra.gmra.mxu1 %vm57_vm0, %v45_v7 }
  0xe5   :  { %v188_v9 = vpop.f32.mrf.mxu0  ;;  %v191_v10 = vpop.f32.mrf.mxu1 }
  0xe6   :  { %v142_v11 = vadd.f32 %v188_v9, %v165_v8  ;;  %v152_v12 = vadd.f32 %v191_v10, %v165_v8 }
  0xe7   :  { %v136_v13 = vpop.f32.mrf.mxu0  ;;  %v146_v14 = vpop.f32.mrf.mxu1 }
  0xe8   :  { %156 = vst [vmem:[%s296_s3 + $0x8] sm:$0xff] %v142_v11  ;;  %158 = vst [vmem:[%s296_s3 + $0x18] sm:$0xff] %v152_v12  ;;  %v137_v15 = vadd.f32 %v165_v8, %v136_v13  ;;  %v147_v16 = vadd.f32 %v165_v8, %v146_v14 }
  0xea   :  { %155 = vst [vmem:[%s296_s3] sm:$0xff] %v137_v15  ;;  %157 = vst [vmem:[%s296_s3 + $0x10] sm:$0xff] %v147_v16 }
  0xeb   :  { %163 = vsyncpa [#allocation3], 1 }
  0xec   :  { %164 = vsyncpa [#allocation5], 1 }

</bundles_post_ra>
